<compile_context>
chip_gen: v5e
topology: v5e:2x2
jax: 0.10.0
libtpu: 0.0.40
codegen_flags: <defaults>
</compile_context>

<pallas_src>
import functools

import jax
import jax.numpy as jnp
from jax import lax
from jax.experimental import pallas as pl
from jax.experimental.pallas import tpu as pltpu

LOG_STD_MIN = -20.0
LOG_STD_MAX = 2.0


def _rup(x, m):
    return ((x + m - 1) // m) * m


# ---------------------------------------------------------------------------
# Kernel
# ---------------------------------------------------------------------------
def actor_kernel(state_ref, p_ref, out_ref, *, Sp, C, A, compute_dtype):
    """One fused MLP forward over a (TB, Sp) batch tile.

    Parameter slab layout (rows, all zero-padded):
      [0        : Sp       )  W1  (S  x H  in top-left)
      [Sp       : Sp +  C  )  W2  (H  x H  in top-left)
      [Sp +  C  : Sp + 2C  )  [Wm | Ws]  (H x 2A in top-left)
      [Sp + 2C  : Sp + 2C+8)  biases: row0=b1, row1=b2, row2=[bm | bs]
    Zero padding is semantics-preserving: relu(0 + 0) = 0 and zero rows/cols
    contribute nothing to downstream matmuls.
    """
    x = state_ref[...].astype(compute_dtype)

    w1 = p_ref[0:Sp, :]
    w2 = p_ref[Sp:Sp + C, :]
    wh = p_ref[Sp + C:Sp + 2 * C, :]
    b_all = p_ref[Sp + 2 * C:Sp + 2 * C + 8, :].astype(jnp.float32)
    b1 = b_all[0:1, :]
    b2 = b_all[1:2, :]
    bh = b_all[2:3, :]

    # linear1 + relu   (MXU matmul, f32 accumulation; bias/relu on VPU in f32)
    h1 = jnp.dot(x, w1, preferred_element_type=jnp.float32) + b1
    h1 = jnp.maximum(h1, 0.0)

    # linear2 + relu
    h2 = jnp.dot(h1.astype(compute_dtype), w2,
                 preferred_element_type=jnp.float32) + b2
    h2 = jnp.maximum(h2, 0.0)

    # fused heads: columns [0:A) = mean, [A:2A) = log_std, [2A:C) = zero pad
    heads = jnp.dot(h2.astype(compute_dtype), wh,
                    preferred_element_type=jnp.float32) + bh

    # clamp only the log_std columns (mean columns pass through untouched;
    # padded columns are exactly zero either way)
    col = lax.broadcasted_iota(jnp.int32, heads.shape, 1)
    clamped = jnp.clip(heads, LOG_STD_MIN, LOG_STD_MAX)
    out = jnp.where(col >= A, clamped, heads)

    out_ref[...] = out.astype(out_ref.dtype)


# ---------------------------------------------------------------------------
# Parameter packing (one contiguous slab -> one DMA)
# ---------------------------------------------------------------------------
def pack_params(params, param_dtype=jnp.float32):
    S, H = params["w1"].shape
    A = params["wm"].shape[1]
    Sp = _rup(S, 8)
    C = max(_rup(H, 128), _rup(2 * A, 128))   # lane-dense column width

    P = jnp.zeros((Sp + 2 * C + 8, C), dtype=param_dtype)
    P = P.at[:S, :H].set(params["w1"].astype(param_dtype))
    P = P.at[Sp:Sp + H, :H].set(params["w2"].astype(param_dtype))
    P = P.at[Sp + C:Sp + C + H, :A].set(params["wm"].astype(param_dtype))
    P = P.at[Sp + C:Sp + C + H, A:2 * A].set(params["ws"].astype(param_dtype))
    P = P.at[Sp + 2 * C, :H].set(params["b1"][0].astype(param_dtype))
    P = P.at[Sp + 2 * C + 1, :H].set(params["b2"][0].astype(param_dtype))
    P = P.at[Sp + 2 * C + 2, :A].set(params["bm"][0].astype(param_dtype))
    P = P.at[Sp + 2 * C + 2, A:2 * A].set(params["bs"][0].astype(param_dtype))
    return P, (S, H, A, Sp, C)


# ---------------------------------------------------------------------------
# Wrapper
# ---------------------------------------------------------------------------
def actor_forward(state, packed, dims, *, batch_tile=256):
    """state: (B, S) f32.  packed/dims: from pack_params().
    Returns (mean, log_std), each (B, A) f32."""
    S, H, A, Sp, C = dims
    B = state.shape[0]

    TB = min(batch_tile, _rup(max(B, 8), 8))   # batch tile (multiple of 8)
    Bp = _rup(B, TB)
    grid = (Bp // TB,)

    # pad state to (Bp, Sp); padded rows/cols are zero (harmless, discarded)
    xs = jnp.zeros((Bp, Sp), dtype=jnp.float32).at[:B, :S].set(state)

    P_rows = packed.shape[0]
    bytes_accessed = (xs.size * xs.dtype.itemsize
                      + packed.size * packed.dtype.itemsize
                      + Bp * C * 4)

    out = pl.pallas_call(
        functools.partial(actor_kernel, Sp=Sp, C=C, A=A,
                          compute_dtype=packed.dtype),
        out_shape=jax.ShapeDtypeStruct((Bp, C), jnp.float32),
        grid_spec=pltpu.PrefetchScalarGridSpec(
            num_scalar_prefetch=0,
            grid=grid,
            in_specs=[
                pl.BlockSpec((TB, Sp), lambda i: (i, 0)),       # state tile
                pl.BlockSpec((P_rows, C), lambda i: (0, 0)),    # params resident
            ],
            out_specs=pl.BlockSpec((TB, C), lambda i: (i, 0)),  # lane-dense out
        ),
        compiler_params=pltpu.CompilerParams(
            dimension_semantics=("parallel",)),  # shards batch over v7x's 2 TCs
        cost_estimate=pl.CostEstimate(
            flops=2 * B * (S * H + H * H + H * 2 * A),
            transcendentals=0,
            bytes_accessed=bytes_accessed),
    )(xs, packed)

    mean = out[:B, :A]
    log_std = out[:B, A:2 * A]
    return mean, log_std


# ---------------------------------------------------------------------------
# Init (mirrors the PyTorch module's __init__) + pure-JAX reference
# ---------------------------------------------------------------------------
def init_params(key, state_size, hidden_size, action_size, init_w=0.003):
    k1, k2, k3, k4, k5, k6, k7, k8 = jax.random.split(key, 8)

    def u(k, shape, bound):
        return jax.random.uniform(k, shape, jnp.float32, -bound, bound)

    b1_bound = 1.0 / jnp.sqrt(state_size)
    b2_bound = 1.0 / jnp.sqrt(hidden_size)

    return {
        # stored as (in, out) for x @ W
        "w1": u(k1, (state_size, hidden_size), b1_bound),
        "b1": u(k2, (1, hidden_size), b1_bound),
        "w2": u(k3, (hidden_size, hidden_size), b2_bound),
        "b2": u(k4, (1, hidden_size), b2_bound),
        "wm": u(k5, (hidden_size, action_size), init_w),
        "bm": u(k6, (1, action_size), init_w),
        "ws": u(k7, (hidden_size, action_size), init_w),
        "bs": u(k8, (1, action_size), init_w),
    }


def ref_forward(state, params):
    h1 = jnp.maximum(state @ params["w1"] + params["b1"], 0.0)
    h2 = jnp.maximum(h1 @ params["w2"] + params["b2"], 0.0)
    mean = h2 @ params["wm"] + params["bm"]
    log_std = jnp.clip(h2 @ params["ws"] + params["bs"], LOG_STD_MIN, LOG_STD_MAX)
    return mean, log_std


if __name__ == "__main__":
    # CartPole-like sizes: state=4, action=1, hidden=32, batch=8
    state_size, action_size, hidden_size, batch = 4, 1, 32, 8

    key = jax.random.PRNGKey(0)
    pkey, skey = jax.random.split(key)
    params = init_params(pkey, state_size, hidden_size, action_size)
    state = jax.random.normal(skey, (batch, state_size), dtype=jnp.float32)

    # f32 params = exact PyTorch numerics; pass jnp.bfloat16 for v6e/v7x MXU rate.
    packed, dims = pack_params(params, param_dtype=jnp.float32)

    mean, log_std = actor_forward(state, packed, dims)
    jax.block_until_ready((mean, log_std))

    # correctness vs pure-JAX reference
    mean_ref, log_std_ref = ref_forward(state, params)
    assert mean.shape == (batch, action_size)
    assert log_std.shape == (batch, action_size)
    assert jnp.allclose(mean, mean_ref, rtol=1e-5, atol=1e-5)
    assert jnp.allclose(log_std, log_std_ref, rtol=1e-5, atol=1e-5)
    assert bool(jnp.all(log_std >= LOG_STD_MIN)) and bool(jnp.all(log_std <= LOG_STD_MAX))

    print("KERNEL_OK")
</pallas_src>

<mosaic_0001>
module attributes {stable_mosaic.version = 11 : i64} {
  func.func @actor_kernel(%arg0: i32, %arg1: memref<8x8xf32, #tpu.memory_space<vmem>>, %arg2: memref<272x128xf32, #tpu.memory_space<vmem>>, %arg3: memref<8x128xf32, #tpu.memory_space<vmem>>) attributes {dimension_semantics = [#tpu.dimension_semantics<parallel>], iteration_bounds = array<i64: 1>, scalar_prefetch = 0 : i64, scratch_operands = 0 : i64, tpu.core_type = #tpu.core_type<tc>, window_params = [{transform_indices = @transform_0, window_bounds = array<i64: 8, 8>}, {pipeline_mode = #tpu.pipeline_mode<synchronous>, transform_indices = @transform_1, window_bounds = array<i64: 272, 128>}, {transform_indices = @transform_2, window_bounds = array<i64: 8, 128>}]} {
    %c0 = arith.constant 0 : index
    %c0_0 = arith.constant 0 : index
    %0 = vector.load %arg1[%c0, %c0_0] : memref<8x8xf32, #tpu.memory_space<vmem>>, vector<8x8xf32>
    %c0_1 = arith.constant 0 : index
    %c0_2 = arith.constant 0 : index
    %1 = vector.load %arg2[%c0_1, %c0_2] : memref<272x128xf32, #tpu.memory_space<vmem>>, vector<8x128xf32>
    %c8 = arith.constant 8 : index
    %c0_3 = arith.constant 0 : index
    %2 = vector.load %arg2[%c8, %c0_3] : memref<272x128xf32, #tpu.memory_space<vmem>>, vector<128x128xf32>
    %c136 = arith.constant 136 : index
    %c0_4 = arith.constant 0 : index
    %3 = vector.load %arg2[%c136, %c0_4] : memref<272x128xf32, #tpu.memory_space<vmem>>, vector<128x128xf32>
    %c264 = arith.constant 264 : index
    %c0_5 = arith.constant 0 : index
    %4 = vector.load %arg2[%c264, %c0_5] : memref<272x128xf32, #tpu.memory_space<vmem>>, vector<8x128xf32>
    %5 = vector.extract_strided_slice %4 {offsets = [0, 0], sizes = [1, 128], strides = [1, 1]} : vector<8x128xf32> to vector<1x128xf32>
    %6 = vector.extract_strided_slice %4 {offsets = [1, 0], sizes = [1, 128], strides = [1, 1]} : vector<8x128xf32> to vector<1x128xf32>
    %7 = vector.extract_strided_slice %4 {offsets = [2, 0], sizes = [1, 128], strides = [1, 1]} : vector<8x128xf32> to vector<1x128xf32>
    %cst = arith.constant dense<0.000000e+00> : vector<8x128xf32>
    %8 = tpu.matmul %0, %1, %cst {dimension_numbers = #tpu.dot_dimension_numbers<[1], [0], [0], [1], [0, 0, 1, 1], [], []>} : vector<8x8xf32>, vector<8x128xf32>, vector<8x128xf32> -> vector<8x128xf32>
    %9 = vector.broadcast %5 : vector<1x128xf32> to vector<8x128xf32>
    %10 = arith.addf %8, %9 : vector<8x128xf32>
    %cst_6 = arith.constant 0.000000e+00 : f32
    %11 = vector.broadcast %cst_6 : f32 to vector<8x128xf32>
    %12 = arith.maximumf %10, %11 : vector<8x128xf32>
    %cst_7 = arith.constant dense<0.000000e+00> : vector<8x128xf32>
    %13 = tpu.matmul %12, %2, %cst_7 {dimension_numbers = #tpu.dot_dimension_numbers<[1], [0], [0], [1], [0, 0, 1, 1], [], []>} : vector<8x128xf32>, vector<128x128xf32>, vector<8x128xf32> -> vector<8x128xf32>
    %14 = vector.broadcast %6 : vector<1x128xf32> to vector<8x128xf32>
    %15 = arith.addf %13, %14 : vector<8x128xf32>
    %cst_8 = arith.constant 0.000000e+00 : f32
    %16 = vector.broadcast %cst_8 : f32 to vector<8x128xf32>
    %17 = arith.maximumf %15, %16 : vector<8x128xf32>
    %cst_9 = arith.constant dense<0.000000e+00> : vector<8x128xf32>
    %18 = tpu.matmul %17, %3, %cst_9 {dimension_numbers = #tpu.dot_dimension_numbers<[1], [0], [0], [1], [0, 0, 1, 1], [], []>} : vector<8x128xf32>, vector<128x128xf32>, vector<8x128xf32> -> vector<8x128xf32>
    %19 = vector.broadcast %7 : vector<1x128xf32> to vector<8x128xf32>
    %20 = arith.addf %18, %19 : vector<8x128xf32>
    %21 = tpu.iota {dimensions = array<i32: 1>} : vector<8x128xi32>
    %cst_10 = arith.constant -2.000000e+01 : f32
    %cst_11 = arith.constant 2.000000e+00 : f32
    %22 = vector.broadcast %cst_10 : f32 to vector<8x128xf32>
    %23 = arith.maximumf %22, %20 : vector<8x128xf32>
    %24 = vector.broadcast %cst_11 : f32 to vector<8x128xf32>
    %25 = arith.minimumf %24, %23 : vector<8x128xf32>
    %c1_i32 = arith.constant 1 : i32
    %26 = vector.broadcast %c1_i32 : i32 to vector<8x128xi32>
    %27 = arith.cmpi sge, %21, %26 : vector<8x128xi32>
    %28 = arith.select %27, %25, %20 : vector<8x128xi1>, vector<8x128xf32>
    %c0_12 = arith.constant 0 : index
    %c0_13 = arith.constant 0 : index
    %29 = vector.load %arg3[%c0_12, %c0_13] : memref<8x128xf32, #tpu.memory_space<vmem>>, vector<8x128xf32>
    tpu.vector_store %arg3[%c0_12, %c0_13], %28 {strides = array<i32>} : memref<8x128xf32, #tpu.memory_space<vmem>>, vector<8x128xf32>,
    return
  }
  func.func @transform_0(%arg0: i32) -> (i32, i32) {
    %c0_i32 = arith.constant 0 : i32
    %c0_i32_0 = arith.constant 0 : i32
    return %arg0, %c0_i32 : i32, i32
  }
  func.func @transform_1(%arg0: i32) -> (i32, i32) {
    %c0_i32 = arith.constant 0 : i32
    %c0_i32_0 = arith.constant 0 : i32
    %c0_i32_1 = arith.constant 0 : i32
    return %c0_i32, %c0_i32_0 : i32, i32
  }
  func.func @transform_2(%arg0: i32) -> (i32, i32) {
    %c0_i32 = arith.constant 0 : i32
    %c0_i32_0 = arith.constant 0 : i32
    return %arg0, %c0_i32 : i32, i32
  }
}

</mosaic_0001>

<bundles_post_ra>
// kernel: tpu_custom_call.1
= control target key start
LH: loop header
LB: loop body
LE: loop exit
PB: predicated region body
PF: predicated region fallthrough
CT: control target
= control target key end

     0   :  { %7 = vsyncpa [#allocation3], 0  ;;  %s284_s0 = inlined_call_operand.hbm [shape: f32[8,8], index: 0, kind: input, shape index: {}]   ;;  %s285_s1 = inlined_call_operand.hbm [shape: f32[272,128], index: 1, kind: input, shape index: {}]   ;;  %s286_s2 = inlined_call_operand.hbm [shape: f32[8,128], index: 2, kind: output, shape index: {}]  }
   0x1   :  { %8 = vsyncpa [#allocation6], 0 }
   0x2   :  { %9 = vsyncpa [#allocation4], 0  ;;  %s15_s11 = sshll.u32 %s284_s0, 4  ;;  %s255_s12 = smov [#allocation2]   ;;  %s16_s11 = int_to_ptr.hbm [resolvable:$true] %s15_s11 }
   0x3   :  { %s17_s13 = sshll.u32 %s255_s12, 4  ;;  %s25_s16 = sshll.u32 %s285_s1, 4  ;;  %s18_s13 = int_to_ptr.vmem [resolvable:$true] %s17_s13  ;;  %s26_s16 = int_to_ptr.hbm [resolvable:$true] %s25_s16 }
   0x4   :  { %20 = dma.hbm_to_vmem [thread:$0]  %s16_s11, 128, %s18_s13, [#allocation3]  }
   0x5   :  { %s256_s17 = smov [#allocation5]   ;;  %s257_s19 = smov 128  }
   0x6   :  { %s27_s18 = sshll.u32 %s256_s17, 4  ;;  %s258_s20 = smov 8   ;;  %s28_s18 = int_to_ptr.vmem [resolvable:$true] %s27_s18 }
   0x7   :  { %33 = dma.hbm_to_vmem [thread:$0]  %s26_s16, 4352, %s28_s18, [#allocation6], %s257_s19, %s257_s19, %s258_s20  }
   0x8   :  { %249 = dma.done.wait [#allocation3], 128  }
   0x9   :  { %250 = vsyncadd [#allocation3], 4294967168 }
   0xa   :  { %251 = dma.done.wait [#allocation6], 4352  }
   0xb   :  { %252 = vsyncadd [#allocation6], 4294962944  ;;  %vm78_vm0 = vcmask 64512   ;;  %v43_v0 = vld [vmem:[#allocation5] sm:$0xff]  ;;  %v42_v1 = vld [vmem:[#allocation2] sm:$0xff]  ;;  %v146_v43 = vlaneseq  ;;  %s259_s0 = smov [#allocation7]  }
   0xc   :  { %v59_v2 = vld [vmem:[#allocation5 + $0x80] sm:$0xff]  ;;  %97 = vmatpush.msra.mxu0 %v43_v0  ;;  %v58_v3 = vld [vmem:[#allocation5 + $0x78] sm:$0xff]  ;;  %v57_v4 = vld [vmem:[#allocation5 + $0x70] sm:$0xff]  ;;  %s158_s1 = sshll.u32 %s259_s0, 4  ;;  %s160_s23 = sshll.u32 %s286_s2, 4  ;;  %s159_s1 = int_to_ptr.vmem [resolvable:$true] %s158_s1  ;;  %s161_s23 = int_to_ptr.hbm [resolvable:$true] %s160_s23 }
   0xd   :  { %104 = vmatpush.msra.mxu1 %v59_v2  ;;  %171 = vmatmul.msk.f32.vlgmr.msra.gmra.mxu0 %vm78_vm0, %v42_v1  ;;  %v56_v5 = vld [vmem:[#allocation5 + $0x68] sm:$0xff]  ;;  %v55_v6 = vld [vmem:[#allocation5 + $0x60] sm:$0xff]  ;;  %v54_v7 = vld [vmem:[#allocation5 + $0x58] sm:$0xff]  ;;  %v147_v46 = vand.u32 127, %v146_v43 }
   0xe   :  { %v53_v8 = vld [vmem:[#allocation5 + $0x50] sm:$0xff]  ;;  %v52_v9 = vld [vmem:[#allocation5 + $0x48] sm:$0xff]  ;;  %v51_v10 = vld [vmem:[#allocation5 + $0x40] sm:$0xff] }
   0xf   :  { %105 = vmatpush.msra.mxu1 %v58_v3  ;;  %v50_v11 = vld [vmem:[#allocation5 + $0x38] sm:$0xff]  ;;  %v49_v12 = vld [vmem:[#allocation5 + $0x30] sm:$0xff]  ;;  %v48_v13 = vld [vmem:[#allocation5 + $0x28] sm:$0xff]  ;;  %vm150_vm1 = vcmp.ge.s32.totalorder %v147_v46, 1 }
  0x10   :  { %v47_v14 = vld [vmem:[#allocation5 + $0x20] sm:$0xff]  ;;  %v46_v15 = vld [vmem:[#allocation5 + $0x18] sm:$0xff]  ;;  %v45_v16 = vld [vmem:[#allocation5 + $0x10] sm:$0xff] }
  0x11   :  { %106 = vmatpush.msra.mxu1 %v57_v4  ;;  %v44_v17 = vld [vmem:[#allocation5 + $0x8] sm:$0xff]  ;;  %v75_v18 = vld [vmem:[#allocation5 + $0x100] sm:$0xff]  ;;  %v74_v19 = vld [vmem:[#allocation5 + $0xf8] sm:$0xff] }
  0x12   :  { %126 = vmatpush.msra.mxu2 %v75_v18  ;;  %v73_v20 = vld [vmem:[#allocation5 + $0xf0] sm:$0xff]  ;;  %v72_v21 = vld [vmem:[#allocation5 + $0xe8] sm:$0xff]  ;;  %v71_v22 = vld [vmem:[#allocation5 + $0xe0] sm:$0xff] }
  0x13   :  { %107 = vmatpush.msra.mxu1 %v56_v5  ;;  %v70_v23 = vld [vmem:[#allocation5 + $0xd8] sm:$0xff]  ;;  %v69_v24 = vld [vmem:[#allocation5 + $0xd0] sm:$0xff]  ;;  %v68_v25 = vld [vmem:[#allocation5 + $0xc8] sm:$0xff] }
  0x14   :  { %127 = vmatpush.msra.mxu2 %v74_v19  ;;  %v67_v26 = vld [vmem:[#allocation5 + $0xc0] sm:$0xff]  ;;  %v66_v27 = vld [vmem:[#allocation5 + $0xb8] sm:$0xff]  ;;  %v65_v28 = vld [vmem:[#allocation5 + $0xb0] sm:$0xff] }
  0x15   :  { %108 = vmatpush.msra.mxu1 %v55_v6  ;;  %v64_v29 = vld [vmem:[#allocation5 + $0xa8] sm:$0xff]  ;;  %v63_v31 = vld [vmem:[#allocation5 + $0xa0] sm:$0xff]  ;;  %v62_v36 = vld [vmem:[#allocation5 + $0x98] sm:$0xff] }
  0x16   :  { %128 = vmatpush.msra.mxu2 %v73_v20  ;;  %v76_v30 = vld [vmem:[#allocation5 + $0x108] sm:$0xff]  ;;  %v61_v37 = vld [vmem:[#allocation5 + $0x90] sm:$0xff] }
  0x17   :  { %109 = vmatpush.msra.mxu1 %v54_v7  ;;  %v77_v32 = vperm.slane %v76_v30, 0  ;;  %v60_v38 = vld [vmem:[#allocation5 + $0x88] sm:$0xff]  ;;  %v103_v39 = vperm.slane %v76_v30, 1  ;;  %v125_v44 = vperm.slane %v76_v30, 2 }
  0x18   :  { %129 = vmatpush.msra.mxu2 %v72_v21 }
  0x19   :  { %110 = vmatpush.msra.mxu1 %v53_v8 }
  0x1a   :  { %130 = vmatpush.msra.mxu2 %v71_v22 }
  0x1b   :  { %111 = vmatpush.msra.mxu1 %v52_v9 }
  0x1c   :  { %131 = vmatpush.msra.mxu2 %v70_v23 }
  0x1d   :  { %112 = vmatpush.msra.mxu1 %v51_v10 }
  0x1e   :  { %132 = vmatpush.msra.mxu2 %v69_v24 }
  0x1f   :  { %113 = vmatpush.msra.mxu1 %v50_v11 }
  0x20   :  { %133 = vmatpush.msra.mxu2 %v68_v25 }
  0x21   :  { %114 = vmatpush.msra.mxu1 %v49_v12 }
  0x22   :  { %134 = vmatpush.msra.mxu2 %v67_v26 }
  0x23   :  { %115 = vmatpush.msra.mxu1 %v48_v13 }
  0x24   :  { %135 = vmatpush.msra.mxu2 %v66_v27 }
  0x25   :  { %116 = vmatpush.msra.mxu1 %v47_v14 }
  0x26   :  { %136 = vmatpush.msra.mxu2 %v65_v28 }
  0x27   :  { %117 = vmatpush.msra.mxu1 %v46_v15 }
  0x28   :  { %137 = vmatpush.msra.mxu2 %v64_v29 }
  0x29   :  { %118 = vmatpush.msra.mxu1 %v45_v16 }
  0x2a   :  { %138 = vmatpush.msra.mxu2 %v63_v31 }
  0x2b   :  { %119 = vmatpush.msra.mxu1 %v44_v17 }
  0x2c   :  { %139 = vmatpush.msra.mxu2 %v62_v36 }
  0x2e   :  { %140 = vmatpush.msra.mxu2 %v61_v37 }
  0x30   :  { %141 = vmatpush.msra.mxu2 %v60_v38 }
  0x8a   :  { %v99_v33 = vpop.f32.mrf.mxu0 }
  0x8b   :  { %v100_v34 = vadd.f32 %v99_v33, %v77_v32 }
  0x8d   :  { %v102_v35 = vmax.f32 %v100_v34, 0.0 }
  0x8f   :  { %120 = vmatmul.f32.vlgmr.msra.gmra.mxu1 %v102_v35 }
 0x10c   :  { %v121_v40 = vpop.f32.mrf.mxu1 }
 0x10d   :  { %v122_v41 = vadd.f32 %v121_v40, %v103_v39 }
 0x10f   :  { %v124_v42 = vmax.f32 %v122_v41, 0.0 }
 0x111   :  { %142 = vmatmul.f32.vlgmr.msra.gmra.mxu2 %v124_v42 }
 0x194   :  { %v143_v45 = vpop.f32.mrf.mxu2 }
 0x195   :  { %v144_v47 = vadd.f32 %v143_v45, %v125_v44 }
 0x197   :  { %v148_v48 = vmax.f32 %v144_v47, -20.0 }
 0x199   :  { %v149_v49 = vmin.f32 %v148_v48, 2.0 }
 0x19b   :  { %v151_v50 = vsel %vm150_vm1, %v149_v49, %v144_v47 }
 0x19c   :  { %152 = vst [vmem:[#allocation7] sm:$0xff] %v151_v50 }
 0x19d   :  { %163 = dma.vmem_to_hbm [thread:$0]  %s159_s1, 128, %s161_s23, [#allocation4]  }
 0x19e   :  { %253 = dma.done.wait [#allocation4], 128  }
 0x19f   :  { %254 = vsyncadd [#allocation4], 4294967168 }
 0x1a0   :  { %168 = vsyncpa [#allocation3], 1 }
 0x1a1   :  { %169 = vsyncpa [#allocation6], 1 }
 0x1a2   :  { %170 = vsyncpa [#allocation4], 1 }

</bundles_post_ra>
